<compile_context>
chip_gen: v7x
topology: tpu7x:2x2x1
jax: 0.10.0
libtpu: 0.0.40
codegen_flags: <defaults>
</compile_context>

<pallas_src>
import functools

import jax
import jax.numpy as jnp
from jax.experimental import pallas as pl
from jax.experimental.pallas import tpu as pltpu

_LANES = 128


def _chip_config():
    """Best-effort chip detection -> (f32 tile bytes, VMEM budget, # TCs).

    Conservative fallback (v5e-like sizing, 1 TensorCore) if detection fails.
    """
    kind = ""
    try:
        kind = (jax.devices()[0].device_kind or "").lower().replace(" ", "")
    except Exception:
        pass
    if "v7" in kind or "tpu7" in kind:
        # v7x: ~3.2 TB/s HBM, 2 TensorCores, 32 MiB default scoped VMEM.
        return 4 << 20, 20 << 20, 2
    if "v6" in kind:
        # v6e: ~1.4 TB/s HBM, 1 TC, 32 MiB default scoped VMEM.
        return 2 << 20, 20 << 20, 1
    # v5e / unknown: ~0.8 TB/s HBM, 1 TC, 16 MiB default scoped VMEM.
    return 1 << 20, 12 << 20, 1


def _charbonnier_kernel(x_ref, y_ref, out_ref, acc_ref, *, rows_valid, eps,
                        block_rows, blocks_per_split):
    """Streaming Charbonnier partial-sum kernel.

    x_ref, y_ref: (block_rows, 128) tiles in VMEM (native dtype, cast here).
    out_ref:      (1, 1) f32 partial sum in SMEM (one per split).
    acc_ref:      (block_rows, 128) f32 VMEM accumulator (per core).
    """
    s = pl.program_id(0)      # split index (CORE_PARALLEL on v7x)
    i = pl.program_id(1)      # block index within the split ("arbitrary")
    n_i = pl.num_programs(1)

    @pl.when(i == 0)
    def _():
        acc_ref[...] = jnp.zeros_like(acc_ref)

    x = x_ref[...].astype(jnp.float32)
    y = y_ref[...].astype(jnp.float32)
    diff = y - x
    err = jnp.sqrt(diff * diff + jnp.float32(eps))

    # Unclamped global block index.  Only blocks whose row range extends past
    # rows_valid (the ragged last real block and phantom trailing blocks of
    # the last split) pay for the mask.  Indices are row-scale (rows = n/128),
    # so int32 cannot overflow for any tensor that fits in HBM.
    g = s * blocks_per_split + i
    needs_mask = (g + 1) * block_rows > rows_valid

    @pl.when(jnp.logical_not(needs_mask))
    def _():
        acc_ref[...] += err

    @pl.when(needs_mask)
    def _():
        # Boundary-padded rows may hold garbage (even NaN): must use a select
        # (jnp.where), never multiply-by-mask.
        row_ids = jax.lax.broadcasted_iota(jnp.int32, err.shape, 0)
        valid = (g * block_rows + row_ids) < rows_valid
        acc_ref[...] += jnp.where(valid, err, jnp.float32(0.0))

    @pl.when(i == n_i - 1)
    def _():
        out_ref[0, 0] = jnp.sum(acc_ref[...])


def _partial_sums(x2, y2, *, rows_valid, eps, block_rows, num_splits,
                  core_parallel):
    """Run the Pallas kernel on (rows_valid, 128) inputs; returns per-split sums."""
    total_blocks = pl.cdiv(rows_valid, block_rows)
    blocks_per_split = pl.cdiv(total_blocks, num_splits)

    def in_map(s, i):
        # Phantom trailing steps (only ever at the tail of the last split when
        # total_blocks % num_splits != 0) clamp onto the previous step's block
        # index, so the pipeliner elides the redundant DMA; their contribution
        # is masked to zero in-kernel.
        return (jnp.minimum(s * blocks_per_split + i, total_blocks - 1), 0)

    kernel = functools.partial(
        _charbonnier_kernel, rows_valid=rows_valid, eps=float(eps),
        block_rows=block_rows, blocks_per_split=blocks_per_split)

    n_main = rows_valid * _LANES
    bytes_in = n_main * (jnp.dtype(x2.dtype).itemsize
                         + jnp.dtype(y2.dtype).itemsize)
    cost = pl.CostEstimate(flops=5 * n_main, transcendentals=n_main,
                           bytes_accessed=bytes_in + 4 * num_splits)

    split_sem = pltpu.CORE_PARALLEL if core_parallel else pltpu.PARALLEL

    return pl.pallas_call(
        kernel,
        out_shape=jax.ShapeDtypeStruct((num_splits, 1), jnp.float32),
        grid_spec=pltpu.PrefetchScalarGridSpec(
            num_scalar_prefetch=0,
            grid=(num_splits, blocks_per_split),
            in_specs=[
                pl.BlockSpec((block_rows, _LANES), in_map),
                pl.BlockSpec((block_rows, _LANES), in_map),
            ],
            out_specs=pl.BlockSpec((1, 1), lambda s, i: (s, 0),
                                   memory_space=pltpu.SMEM),
            scratch_shapes=[pltpu.VMEM((block_rows, _LANES), jnp.float32)],
        ),
        compiler_params=pltpu.CompilerParams(
            dimension_semantics=(split_sem, pltpu.ARBITRARY)),
        cost_estimate=cost,
    )(x2, y2)


def charbonnier_loss(x, y, eps=1e-06, *, block_rows=None, num_splits=None):
    """Pallas TPU Charbonnier loss: mean(sqrt((y - x)^2 + eps))."""
    assert x.shape == y.shape, "x and y must have the same shape"
    n = x.size
    if n == 0:
        return jnp.float32(jnp.nan)  # matches torch.mean of an empty tensor

    xf = jnp.ravel(x)
    yf = jnp.ravel(y)
    rem = n % _LANES
    main = n - rem

    total = jnp.float32(0.0)
    if rem:
        # <128-element ragged tail handled with a trivial jnp epilogue instead
        # of jnp.pad-ing (re-reading + re-writing) both full tensors.
        xt = xf[main:].astype(jnp.float32)
        yt = yf[main:].astype(jnp.float32)
        dt = yt - xt
        total = jnp.sum(jnp.sqrt(dt * dt + jnp.float32(eps)))

    if main:
        xm = xf if rem == 0 else xf[:main]
        ym = yf if rem == 0 else yf[:main]
        rows = main // _LANES
        x2 = xm.reshape(rows, _LANES)   # contiguous collapse: free
        y2 = ym.reshape(rows, _LANES)

        tile_bytes, vmem_budget, num_cores = _chip_config()
        itemsize = max(jnp.dtype(x.dtype).itemsize, jnp.dtype(y.dtype).itemsize)

        if block_rows is None:
            # Constant *bytes* per step across dtypes (bf16 doubles rows), then
            # shrink until 2 inputs x 2 pipeline buffers + f32 accumulator fit
            # inside the chip's default scoped-VMEM limit.
            block_rows = max(tile_bytes // (_LANES * itemsize), 8)
            while (4 * block_rows * _LANES * itemsize
                   + block_rows * _LANES * 4) > vmem_budget and block_rows > 512:
                block_rows //= 2
        block_rows = min(block_rows, rows)
        total_blocks = pl.cdiv(rows, block_rows)

        if num_splits is None:
            # Split across TensorCores only on multi-TC chips (v7x) and only
            # when each core gets >= 2 blocks; on 1-TC chips (v5e/v6e) a split
            # is just a serial loop with extra init/epilogue work.
            num_splits = num_cores if total_blocks >= 2 * num_cores else 1
        num_splits = max(1, min(num_splits, total_blocks))
        core_parallel = (num_splits > 1) and (num_cores > 1)

        try:
            partials = _partial_sums(
                x2, y2, rows_valid=rows, eps=eps, block_rows=block_rows,
                num_splits=num_splits, core_parallel=core_parallel)
        except Exception:
            if num_splits == 1 and not core_parallel and block_rows <= 1024:
                raise
            # Conservative retry guarding the CORE_PARALLEL / large-tile path
            # on unexpected chips or toolchains; semantics are identical.
            partials = _partial_sums(
                x2, y2, rows_valid=rows, eps=eps,
                block_rows=min(1024, rows), num_splits=1, core_parallel=False)
        total = total + jnp.sum(partials)

    return total / jnp.float32(n)


def _ref_loss(x, y, eps=1e-06):
    x = x.astype(jnp.float32)
    y = y.astype(jnp.float32)
    diff = y - x
    return jnp.mean(jnp.sqrt(diff * diff + jnp.float32(eps)))


if __name__ == "__main__":
    key = jax.random.PRNGKey(0)

    # 1) Canonical small NCHW case: batch=2, channels=4, spatial=16.
    kx, ky, key = jax.random.split(key, 3)
    x = jax.random.normal(kx, (2, 4, 16, 16), dtype=jnp.float32)
    y = jax.random.normal(ky, (2, 4, 16, 16), dtype=jnp.float32)
    loss = jax.block_until_ready(charbonnier_loss(x, y))
    ref = _ref_loss(x, y)
    assert jnp.allclose(loss, ref, rtol=1e-5, atol=1e-6), (loss, ref)

    # 2) Ragged size (n % 128 != 0): exercises the no-pad jnp tail path.
    kx, ky, key = jax.random.split(key, 3)
    xr = jax.random.normal(kx, (3, 5, 7, 11), dtype=jnp.float32)
    yr = jax.random.normal(ky, (3, 5, 7, 11), dtype=jnp.float32)
    loss_r = jax.block_until_ready(charbonnier_loss(xr, yr))
    ref_r = _ref_loss(xr, yr)
    assert jnp.allclose(loss_r, ref_r, rtol=1e-5, atol=1e-6), (loss_r, ref_r)

    # 3) Forced 2 splits + small blocks with odd total_blocks: exercises the
    #    partial-last-block mask and the phantom-step clamp.
    kx, ky, key = jax.random.split(key, 3)
    xs = jax.random.normal(kx, (2, 4, 64, 64), dtype=jnp.float32)
    ys = jax.random.normal(ky, (2, 4, 64, 64), dtype=jnp.float32)
    loss_s = jax.block_until_ready(
        charbonnier_loss(xs, ys, block_rows=56, num_splits=2))
    ref_s = _ref_loss(xs, ys)
    assert jnp.allclose(loss_s, ref_s, rtol=1e-5, atol=1e-6), (loss_s, ref_s)

    # 4) Larger f32 case with auto tiling/splits (multi-block on all chips;
    #    CORE_PARALLEL two-way split on v7x).
    kx, ky, key = jax.random.split(key, 3)
    xb = jax.random.normal(kx, (4, 4, 512, 512), dtype=jnp.float32)
    yb = jax.random.normal(ky, (4, 4, 512, 512), dtype=jnp.float32)
    loss_b = jax.block_until_ready(charbonnier_loss(xb, yb))
    ref_b = _ref_loss(xb, yb)
    assert jnp.allclose(loss_b, ref_b, rtol=1e-4, atol=1e-5), (loss_b, ref_b)

    # 5) bf16 inputs: in-kernel cast (half the HBM bytes), dtype-scaled tiles.
    kx, ky, key = jax.random.split(key, 3)
    xh = jax.random.normal(kx, (2, 4, 128, 128), dtype=jnp.float32).astype(jnp.bfloat16)
    yh = jax.random.normal(ky, (2, 4, 128, 128), dtype=jnp.float32).astype(jnp.bfloat16)
    loss_h = jax.block_until_ready(charbonnier_loss(xh, yh))
    ref_h = _ref_loss(xh, yh)
    assert jnp.allclose(loss_h, ref_h, rtol=1e-4, atol=1e-5), (loss_h, ref_h)

    print("KERNEL_OK")
</pallas_src>

<mosaic_0001>
module attributes {stable_mosaic.version = 11 : i64} {
  func.func @_charbonnier_kernel(%arg0: i32, %arg1: i32, %arg2: memref<16x128xf32, #tpu.memory_space<vmem>>, %arg3: memref<16x128xf32, #tpu.memory_space<vmem>>, %arg4: memref<1x1xf32, #tpu.memory_space<smem>>, %arg5: memref<16x128xf32, #tpu.memory_space<vmem>>) attributes {dimension_semantics = [#tpu.dimension_semantics<parallel>, #tpu.dimension_semantics<arbitrary>], iteration_bounds = array<i64: 1, 1>, scalar_prefetch = 0 : i64, scratch_operands = 1 : i64, tpu.core_type = #tpu.core_type<tc>, window_params = [{transform_indices = @transform_0, window_bounds = array<i64: 16, 128>}, {transform_indices = @transform_1, window_bounds = array<i64: 16, 128>}, {transform_indices = @transform_2, window_bounds = array<i64: 1, 1>}]} {
    %c0_i32 = arith.constant 0 : i32
    %0 = arith.cmpi eq, %arg1, %c0_i32 : i32
    %1 = arith.extui %0 : i1 to i32
    %c0_i32_0 = arith.constant 0 : i32
    %2 = arith.cmpi ne, %1, %c0_i32_0 : i32
    scf.if %2 {
      %cst_10 = arith.constant 0.000000e+00 : f32
      %23 = vector.broadcast %cst_10 : f32 to vector<16x128xf32>
      %c0_11 = arith.constant 0 : index
      %c0_12 = arith.constant 0 : index
      %24 = vector.load %arg5[%c0_11, %c0_12] : memref<16x128xf32, #tpu.memory_space<vmem>>, vector<16x128xf32>
      tpu.vector_store %arg5[%c0_11, %c0_12], %23 {strides = array<i32>} : memref<16x128xf32, #tpu.memory_space<vmem>>, vector<16x128xf32>,
    } else {
    }
    %c0 = arith.constant 0 : index
    %c0_1 = arith.constant 0 : index
    %3 = vector.load %arg2[%c0, %c0_1] : memref<16x128xf32, #tpu.memory_space<vmem>>, vector<16x128xf32>
    %c0_2 = arith.constant 0 : index
    %c0_3 = arith.constant 0 : index
    %4 = vector.load %arg3[%c0_2, %c0_3] : memref<16x128xf32, #tpu.memory_space<vmem>>, vector<16x128xf32>
    %5 = arith.subf %4, %3 : vector<16x128xf32>
    %6 = arith.mulf %5, %5 : vector<16x128xf32>
    %cst = arith.constant 9.99999997E-7 : f32
    %7 = vector.broadcast %cst : f32 to vector<16x128xf32>
    %8 = arith.addf %6, %7 : vector<16x128xf32>
    %9 = math.sqrt %8 : vector<16x128xf32>
    %c1_i32 = arith.constant 1 : i32
    %10 = arith.muli %arg0, %c1_i32 : i32
    %11 = arith.addi %10, %arg1 : i32
    %c1_i32_4 = arith.constant 1 : i32
    %12 = arith.addi %11, %c1_i32_4 : i32
    %c16_i32 = arith.constant 16 : i32
    %13 = arith.muli %12, %c16_i32 : i32
    %c16_i32_5 = arith.constant 16 : i32
    %14 = arith.cmpi sgt, %13, %c16_i32_5 : i32
    %true = arith.constant true
    %15 = arith.xori %14, %true : i1
    %16 = arith.extui %15 : i1 to i32
    %c0_i32_6 = arith.constant 0 : i32
    %17 = arith.cmpi ne, %16, %c0_i32_6 : i32
    scf.if %17 {
      %c0_10 = arith.constant 0 : index
      %c0_11 = arith.constant 0 : index
      %23 = vector.load %arg5[%c0_10, %c0_11] : memref<16x128xf32, #tpu.memory_space<vmem>>, vector<16x128xf32>
      %24 = arith.addf %23, %9 : vector<16x128xf32>
      %c0_12 = arith.constant 0 : index
      %c0_13 = arith.constant 0 : index
      %25 = vector.load %arg5[%c0_12, %c0_13] : memref<16x128xf32, #tpu.memory_space<vmem>>, vector<16x128xf32>
      tpu.vector_store %arg5[%c0_12, %c0_13], %24 {strides = array<i32>} : memref<16x128xf32, #tpu.memory_space<vmem>>, vector<16x128xf32>,
    } else {
    }
    %18 = arith.extui %14 : i1 to i32
    %c0_i32_7 = arith.constant 0 : i32
    %19 = arith.cmpi ne, %18, %c0_i32_7 : i32
    scf.if %19 {
      %23 = tpu.iota {dimensions = array<i32: 0>} : vector<16x128xi32>
      %c16_i32_10 = arith.constant 16 : i32
      %24 = arith.muli %11, %c16_i32_10 : i32
      %25 = vector.broadcast %24 : i32 to vector<16x128xi32>
      %26 = arith.addi %25, %23 : vector<16x128xi32>
      %c16_i32_11 = arith.constant 16 : i32
      %27 = vector.broadcast %c16_i32_11 : i32 to vector<16x128xi32>
      %28 = arith.cmpi slt, %26, %27 : vector<16x128xi32>
      %c0_12 = arith.constant 0 : index
      %c0_13 = arith.constant 0 : index
      %29 = vector.load %arg5[%c0_12, %c0_13] : memref<16x128xf32, #tpu.memory_space<vmem>>, vector<16x128xf32>
      %cst_14 = arith.constant 0.000000e+00 : f32
      %30 = vector.broadcast %cst_14 : f32 to vector<16x128xf32>
      %31 = arith.select %28, %9, %30 : vector<16x128xi1>, vector<16x128xf32>
      %32 = arith.addf %29, %31 : vector<16x128xf32>
      %c0_15 = arith.constant 0 : index
      %c0_16 = arith.constant 0 : index
      %33 = vector.load %arg5[%c0_15, %c0_16] : memref<16x128xf32, #tpu.memory_space<vmem>>, vector<16x128xf32>
      tpu.vector_store %arg5[%c0_15, %c0_16], %32 {strides = array<i32>} : memref<16x128xf32, #tpu.memory_space<vmem>>, vector<16x128xf32>,
    } else {
    }
    %c0_i32_8 = arith.constant 0 : i32
    %20 = arith.cmpi eq, %arg1, %c0_i32_8 : i32
    %21 = arith.extui %20 : i1 to i32
    %c0_i32_9 = arith.constant 0 : i32
    %22 = arith.cmpi ne, %21, %c0_i32_9 : i32
    scf.if %22 {
      %c0_10 = arith.constant 0 : index
      %c0_11 = arith.constant 0 : index
      %23 = vector.load %arg5[%c0_10, %c0_11] : memref<16x128xf32, #tpu.memory_space<vmem>>, vector<16x128xf32>
      %24 = vector.shape_cast %23 : vector<16x128xf32> to vector<1x16x128xf32>
      %cst_12 = arith.constant dense<0.000000e+00> : vector<1xf32>
      %25 = vector.multi_reduction <add>, %24, %cst_12 [1, 2] : vector<1x16x128xf32> to vector<1xf32>
      %26 = vector.shape_cast %25 : vector<1xf32> to vector<1x1x1xf32>
      %27 = vector.extract %26[0, 0, 0] : f32 from vector<1x1x1xf32>
      %c0_13 = arith.constant 0 : index
      %c0_14 = arith.constant 0 : index
      %28 = memref.load %arg4[%c0_13, %c0_14] : memref<1x1xf32, #tpu.memory_space<smem>>
      memref.store %27, %arg4[%c0_13, %c0_14] : memref<1x1xf32, #tpu.memory_space<smem>>
    } else {
    }
    return
  }
  func.func @transform_0(%arg0: i32, %arg1: i32) -> (i32, i32) {
    %c1_i32 = arith.constant 1 : i32
    %0 = arith.muli %arg0, %c1_i32 : i32
    %1 = arith.addi %0, %arg1 : i32
    %c0_i32 = arith.constant 0 : i32
    %2 = arith.minsi %1, %c0_i32 : i32
    %c0_i32_0 = arith.constant 0 : i32
    %c0_i32_1 = arith.constant 0 : i32
    return %2, %c0_i32_0 : i32, i32
  }
  func.func @transform_1(%arg0: i32, %arg1: i32) -> (i32, i32) {
    %c1_i32 = arith.constant 1 : i32
    %0 = arith.muli %arg0, %c1_i32 : i32
    %1 = arith.addi %0, %arg1 : i32
    %c0_i32 = arith.constant 0 : i32
    %2 = arith.minsi %1, %c0_i32 : i32
    %c0_i32_0 = arith.constant 0 : i32
    %c0_i32_1 = arith.constant 0 : i32
    return %2, %c0_i32_0 : i32, i32
  }
  func.func @transform_2(%arg0: i32, %arg1: i32) -> (i32, i32) {
    %c0_i32 = arith.constant 0 : i32
    %c0_i32_0 = arith.constant 0 : i32
    return %arg0, %c0_i32 : i32, i32
  }
}

</mosaic_0001>

<bundles_post_ra>
// kernel: tpu_custom_call.1
= control target key start
LH: loop header
LB: loop body
LE: loop exit
PB: predicated region body
PF: predicated region fallthrough
CT: control target
= control target key end

     0   :  { %7 = vsyncpa [#allocation4], 0  ;;  %s287_s0 = inlined_call_operand.hbm [shape: f32[16,128], index: 0, kind: input, shape index: {}]   ;;  %s288_s1 = inlined_call_operand.hbm [shape: f32[16,128], index: 1, kind: input, shape index: {}]   ;;  %s289_s2 = inlined_call_operand.hbm [shape: f32[1,1], index: 2, kind: output, shape index: {}]  }
   0x1   :  { %8 = vsyncpa [#allocation7], 0 }
   0x2   :  { %9 = vsyncpa [#allocation5], 0  ;;  %s231_s9 = smov [#allocation3]   ;;  %s171_s13 = scalar_lea.hbm %s287_s0, 256 }
   0x3   :  { %s21_s10 = sshll.u32 %s231_s9, 4  ;;  %p172_p0 = scmp.ne.s32.totalorder %s287_s0, %s171_s13  ;;  %s22_s10 = int_to_ptr.vmem [resolvable:$true] %s21_s10 }
   0x4   :  { %p175_p1 = scmp.lt.u32.totalorder %s171_s13, %s287_s0 }
   0x6   :  { %p177_p2 = pnand %p175_p1, %p172_p0 }
   0x8   :  { %180 = shalt.err (!%p177_p2)
}
   0x9   :  { %s181_s18 = scalar_lea.vmem %s22_s10, 256  ;;  %p186_p4 = scmp.lt.s32.totalorder %s22_s10, %s22_s10 }
   0xa   :  { %p182_p3 = scmp.ne.s32.totalorder %s22_s10, %s181_s18  ;;  %p187_p5 = scmp.lt.s32.totalorder %s181_s18, %s181_s18 }
   0xc   :  { %p188_p6 = por %p187_p5, %p186_p4 }
   0xe   :  { %p189_p7 = pnand %p188_p6, %p182_p3 }
  0x10   :  { %192 = shalt.err (!%p189_p7)
}
  0x11   :  { %s232_s19 = smov 128   ;;  %s233_s20 = smov 8  }
  0x12   :  { %27 = dma.hbm_to_vmem [thread:$0]  %s287_s0, 256, %s22_s10, [#allocation4], %s232_s19, %s232_s19, %s233_s20  }
  0x13   :  { %s234_s23 = smov [#allocation6]   ;;  %s193_s27 = scalar_lea.hbm %s288_s1, 256 }
  0x14   :  { %s39_s24 = sshll.u32 %s234_s23, 4  ;;  %p194_p8 = scmp.ne.s32.totalorder %s288_s1, %s193_s27  ;;  %s40_s24 = int_to_ptr.vmem [resolvable:$true] %s39_s24 }
  0x15   :  { %p197_p9 = scmp.lt.u32.totalorder %s193_s27, %s288_s1 }
  0x17   :  { %p199_p10 = pnand %p197_p9, %p194_p8 }
  0x19   :  { %202 = shalt.err (!%p199_p10)
}
  0x1a   :  { %s203_s4 = scalar_lea.vmem %s40_s24, 256  ;;  %p208_p12 = scmp.lt.s32.totalorder %s40_s24, %s40_s24 }
  0x1b   :  { %p204_p11 = scmp.ne.s32.totalorder %s40_s24, %s203_s4  ;;  %p209_p13 = scmp.lt.s32.totalorder %s203_s4, %s203_s4 }
  0x1d   :  { %p210_p0 = por %p209_p13, %p208_p12 }
  0x1f   :  { %p211_p1 = pnand %p210_p0, %p204_p11 }
  0x21   :  { %214 = shalt.err (!%p211_p1)
}
  0x22   :  { %45 = dma.hbm_to_vmem [thread:$0]  %s288_s1, 256, %s40_s24, [#allocation7], %s232_s19, %s232_s19, %s233_s20  }
  0x23   :  { %225 = dma.done.wait [#allocation4], 256  }
  0x24   :  { %226 = vsyncadd [#allocation4], 4294967040 }
  0x25   :  { %227 = dma.done.wait [#allocation7], 256  }
  0x26   :  { %228 = vsyncadd [#allocation7], 4294967040  ;;  %v66_v0 = vld [vmem:[#allocation3] sm:$0xff]  ;;  %v67_v1 = vld [vmem:[#allocation3 + $0x8] sm:$0xff]  ;;  %s215_s8 = scalar_lea.hbm %s289_s2, 16 }
  0x27   :  { %v68_v2 = vld [vmem:[#allocation6] sm:$0xff]  ;;  %v69_v3 = vld [vmem:[#allocation6 + $0x8] sm:$0xff]  ;;  %p216_p2 = scmp.ne.s32.totalorder %s289_s2, %s215_s8  ;;  %p219_p3 = scmp.lt.u32.totalorder %s215_s8, %s289_s2 }
  0x28   :  { %v70_v4 = vsub.f32 %v68_v2, %v66_v0  ;;  %v71_v5 = vsub.f32 %v69_v3, %v67_v1 }
  0x29   :  { %p221_p4 = pnand %p219_p3, %p216_p2 }
  0x2a   :  { %v72_v6 = vmul.f32 %v70_v4, %v70_v4  ;;  %v73_v7 = vmul.f32 %v71_v5, %v71_v5 }
  0x2c   :  { %v74_v8 = vadd.f32 1e-06, %v72_v6  ;;  %v75_v9 = vadd.f32 1e-06, %v73_v7 }
  0x2e   :  { %167 = vrsqrt.f32 %v74_v8  ;;  %vm78_vm0 = vcmp.eq.f32.partialorder %v74_v8, inf  ;;  %v81_v11 = vand.u32 2147483648, %v74_v8  ;;  %vm80_vm1 = vcmp.eq.f32.partialorder %v74_v8, 0.0 }
  0x2f   :  { %169 = vrsqrt.f32 %v75_v9  ;;  %vm85_vm2 = vcmp.eq.f32.partialorder %v75_v9, inf  ;;  %v88_v14 = vand.u32 2147483648, %v75_v9  ;;  %vm87_vm3 = vcmp.eq.f32.partialorder %v75_v9, 0.0 }
  0x38   :  { %v168_v10 = vpop.eup %167 }
  0x39   :  { %v170_v12 = vpop.eup %169  ;;  %v77_v13 = vmul.f32 %v168_v10, %v74_v8 }
  0x3a   :  { %v84_v15 = vmul.f32 %v170_v12, %v75_v9 }
  0x3b   :  { %v79_v16 = vsel %vm78_vm0, %v74_v8, %v77_v13 }
  0x3c   :  { %v82_v17 = vsel %vm80_vm1, %v81_v11, %v79_v16  ;;  %v86_v18 = vsel %vm85_vm2, %v75_v9, %v84_v15 }
  0x3d   :  { %v89_v19 = vsel %vm87_vm3, %v88_v14, %v86_v18 }
  0x3e   :  { %v129_v20 = vadd.f32 %v89_v19, %v82_v17 }
  0x40   :  { %130 = vadd.xlane.f32.xlu0 %v129_v20 }
  0xcd   :  { %v131_v21 = vpop.xlane.xlu0 %130 }
  0xce   :  { %v132_v22 = vrot.slane %v131_v21, 4 }
  0xd0   :  { %v133_v23 = vadd.f32 %v132_v22, %v131_v21 }
  0xd2   :  { %v134_v24 = vrot.slane %v133_v23, 2 }
  0xd4   :  { %v135_v25 = vadd.f32 %v134_v24, %v133_v23 }
  0xd6   :  { %v136_v26 = vrot.slane %v135_v25, 1 }
  0xd8   :  { %v137_v27 = vadd.f32 %v136_v26, %v135_v25 }
  0xda   :  { %160 = vpush %v137_v27 }
 0x10b   :  { %s161_s1 = spop %160 }
 0x10c   :  { %140 = sst [smem:[#allocation8]] %s161_s1 }
 0x10d   :  { %224 = shalt.err (!%p221_p4)
}
 0x10e   :  { %s235_s13 = smov [#allocation8]  }
 0x10f   :  { %148 = dma.smem_to_hbm %s235_s13, 16, %s289_s2, [#allocation5]  }
 0x110   :  { %229 = dma.done.wait [#allocation5], 16  }
 0x111   :  { %230 = vsyncadd [#allocation5], 4294967280 }
 0x112   :  { %152 = sfence }
 0x113   :  { %153 = vsyncpa [#allocation4], 1 }
 0x114   :  { %154 = vsyncpa [#allocation7], 1 }
 0x115   :  { %155 = vsyncpa [#allocation5], 1 }

</bundles_post_ra>
